<compile_context>
chip_gen: v5e
topology: v5e:2x2
jax: 0.10.0
libtpu: 0.0.40
codegen_flags: <defaults>
</compile_context>

<pallas_src>
import jax
import jax.numpy as jnp
from jax.experimental import pallas as pl
from jax.experimental.pallas import tpu as pltpu


# ---------------------------------------------------------------------------
# Backward Pallas kernel:  dx = -lambda * grads   (elementwise, memory-bound)
# ---------------------------------------------------------------------------
_LANES = 512                           # lane-dense last dim: wide unmasked vst stores
_SMALL_N = 256 * 1024                  # below this, plain jnp (XLA fuses it for free)
_DEFAULT_BLOCK_BYTES = 2 * 1024 * 1024 # per buffer; 4 bufs (in/out double-buffered) = 8 MiB
_V7X_BLOCK_BYTES = 4 * 1024 * 1024     # v7x: fast HBM makes per-step overhead relatively costly


def _target_block_bytes():
    """Per-buffer block bytes. v7x (64 MiB VMEM/TC, ~3.2 TB/s HBM) benefits from
    bigger blocks; v5e/v6e (128 MiB VMEM reported) stay at the conservative
    2 MiB so v5e's 16 MiB scoped-VMEM default is never at risk."""
    try:
        info = pltpu.get_tpu_info()
        if info.vmem_capacity_bytes <= 64 * 1024 * 1024:   # v7x-class part
            return _V7X_BLOCK_BYTES
    except Exception:
        pass
    return _DEFAULT_BLOCK_BYTES


def _neg_scale_kernel(lam_ref, g_ref, o_ref):
    # lam_ref: (1,) float32 scalar in SMEM; g_ref / o_ref: (block_rows, _LANES) VMEM tiles.
    # Casting -lambda to the gradient dtype matches torch's grads.new_tensor(lambda_).
    o_ref[...] = g_ref[...] * (-lam_ref[0]).astype(o_ref.dtype)


def _round_up(x, m):
    return -(-x // m) * m


def _pick_block_rows(rows, itemsize):
    target_rows = max(32, (_target_block_bytes() // (itemsize * _LANES)) // 32 * 32)
    block_rows = min(target_rows, rows)
    # Keep >= 2 grid steps: enables DMA/compute overlap and lets the v7x
    # megacore shard the "parallel" grid axis across both TensorCores.
    if rows > 32 and pl.cdiv(rows, block_rows) < 2:
        block_rows = _round_up(-(-rows // 2), 32)
    return block_rows


def _neg_scale_pallas(g, lam, *, min_pallas_elems=_SMALL_N):
    """dx = -lam * g.  Pallas streaming kernel for large lane-aligned gradients;
    plain (fused) jnp for small or ragged ones — both are at the HBM roofline,
    and the fallback avoids any pad / slice copy and kernel dispatch cost."""
    lam = jnp.asarray(lam, jnp.float32)
    n = g.size
    if n < max(min_pallas_elems, 1) or (n % _LANES) != 0:
        return (-lam).astype(g.dtype) * g

    rows = n // _LANES
    g2d = g.reshape(rows, _LANES)                 # free for contiguous arrays
    block_rows = _pick_block_rows(rows, g.dtype.itemsize)
    num_blocks = pl.cdiv(rows, block_rows)        # partial edge block is masked by Pallas
    lam_arr = lam.reshape(1)                      # runtime scalar -> SMEM (no recompiles)

    out2d = pl.pallas_call(
        _neg_scale_kernel,
        out_shape=jax.ShapeDtypeStruct((rows, _LANES), g.dtype),
        grid=(num_blocks,),
        in_specs=[
            pl.BlockSpec(memory_space=pltpu.MemorySpace.SMEM),     # lambda scalar
            pl.BlockSpec((block_rows, _LANES), lambda i: (i, 0)),  # gradient tile
        ],
        out_specs=pl.BlockSpec((block_rows, _LANES), lambda i: (i, 0)),
        input_output_aliases={1: 0},              # donate the gradient buffer
        cost_estimate=pl.CostEstimate(
            flops=n,
            bytes_accessed=2 * n * g.dtype.itemsize,
            transcendentals=0,
        ),
        compiler_params=pltpu.CompilerParams(
            dimension_semantics=("parallel",),
            vmem_limit_bytes=32 * 1024 * 1024,
        ),
    )(lam_arr, g2d)

    return out2d.reshape(g.shape)


# ---------------------------------------------------------------------------
# custom_vjp: forward identity, backward gradient reversal
# ---------------------------------------------------------------------------
@jax.custom_vjp
def _gradient_reversal(x, lam):
    return x


def _gr_fwd(x, lam):
    return x, lam


def _gr_bwd(lam, g):
    # Cotangent for lam is zero (matches torch's `return (dx, None)`).
    return _neg_scale_pallas(g, lam), jnp.zeros_like(lam)


_gradient_reversal.defvjp(_gr_fwd, _gr_bwd)


def gradient_reversal(x, lambda_=1.0):
    """Forward: identity.  Backward: incoming grads multiplied by -lambda_.
    lambda_ is a traced float32 operand, so annealing it never recompiles."""
    return _gradient_reversal(x, jnp.asarray(lambda_, jnp.float32))


class GradientReversal:
    """Mirror of the PyTorch nn.Module (no parameters)."""

    def __init__(self, lambda_=1):
        self.lambda_ = float(lambda_)

    def __call__(self, x):
        return gradient_reversal(x, self.lambda_)


# ---------------------------------------------------------------------------
# Demo / smoke test
# ---------------------------------------------------------------------------
if __name__ == "__main__":
    key = jax.random.PRNGKey(0)
    k0, k1, k2, k3 = jax.random.split(key, 4)

    # Forward (identity) on the module's natural NCHW-ish shape.
    x = jax.random.normal(k0, (2, 4, 16, 16), dtype=jnp.float32)
    module = GradientReversal(lambda_=1.0)
    y = jax.block_until_ready(module(x))
    assert y.shape == x.shape and y.dtype == x.dtype
    assert bool(jnp.allclose(y, x)), "forward must be identity"

    # Backward, small gradient -> fused jnp fallback path.
    dx = jax.block_until_ready(
        jax.grad(lambda a: jnp.sum(gradient_reversal(a, 1.0)))(x))
    assert bool(jnp.allclose(dx, -jnp.ones_like(x))), "backward must flip sign"

    # Backward, larger lane-aligned gradient -> Pallas streaming kernel.
    xb = jax.random.normal(k1, (1024, 512), dtype=jnp.float32)      # 512K elems
    dxb = jax.block_until_ready(
        jax.grad(lambda a: jnp.sum(gradient_reversal(a, 0.5)))(xb))
    assert dxb.shape == xb.shape
    assert bool(jnp.allclose(dxb, -0.5 * jnp.ones_like(xb)))

    # Pallas path with a partial (masked) edge block: 600 rows, 2-step grid.
    xe = jax.random.normal(k2, (600, 512), dtype=jnp.float32)       # 307200 elems
    dxe = jax.block_until_ready(
        jax.grad(lambda a: jnp.sum(gradient_reversal(a, 2.0)))(xe))
    assert bool(jnp.allclose(dxe, -2.0 * jnp.ones_like(xe)))

    # bf16 gradients through the Pallas kernel.
    xh = jax.random.normal(k3, (1024, 512), dtype=jnp.float32).astype(jnp.bfloat16)
    dxh = jax.block_until_ready(
        jax.grad(lambda a: jnp.sum(gradient_reversal(a, 1.5).astype(jnp.float32)))(xh))
    assert dxh.dtype == jnp.bfloat16
    assert bool(jnp.allclose(dxh.astype(jnp.float32), -1.5, atol=1e-2))

    # Ragged element count (not a multiple of 512) -> fused fallback.
    xo = jax.random.normal(jax.random.PRNGKey(7), (3, 5, 7), dtype=jnp.float32)
    dxo = jax.block_until_ready(
        jax.grad(lambda a: jnp.sum(gradient_reversal(a, 2.0)))(xo))
    assert dxo.shape == xo.shape
    assert bool(jnp.allclose(dxo, -2.0 * jnp.ones_like(xo)))

    print("KERNEL_OK")
</pallas_src>

<mosaic_0001>
module attributes {stable_mosaic.version = 11 : i64} {
  func.func @_neg_scale_kernel(%arg0: i32, %arg1: memref<1xf32, #tpu.memory_space<smem>>, %arg2: memref<512x512xf32, #tpu.memory_space<vmem>>, %arg3: memref<512x512xf32, #tpu.memory_space<vmem>>) attributes {dimension_semantics = [#tpu.dimension_semantics<parallel>], iteration_bounds = array<i64: 2>, scalar_prefetch = 0 : i64, scratch_operands = 0 : i64, tpu.core_type = #tpu.core_type<tc>, window_params = [{transform_indices = @transform_0, window_bounds = array<i64: 1>}, {transform_indices = @transform_1, window_bounds = array<i64: 512, 512>}, {transform_indices = @transform_2, window_bounds = array<i64: 512, 512>}]} {
    %c0 = arith.constant 0 : index
    %c0_0 = arith.constant 0 : index
    %0 = vector.load %arg2[%c0, %c0_0] : memref<512x512xf32, #tpu.memory_space<vmem>>, vector<512x512xf32>
    %c0_1 = arith.constant 0 : index
    %1 = memref.load %arg1[%c0_1] : memref<1xf32, #tpu.memory_space<smem>>
    %cst = arith.constant 0.000000e+00 : f32
    %2 = arith.subf %cst, %1 : f32
    %3 = vector.broadcast %2 : f32 to vector<512x512xf32>
    %4 = arith.mulf %0, %3 : vector<512x512xf32>
    %c0_2 = arith.constant 0 : index
    %c0_3 = arith.constant 0 : index
    %5 = vector.load %arg3[%c0_2, %c0_3] : memref<512x512xf32, #tpu.memory_space<vmem>>, vector<512x512xf32>
    tpu.vector_store %arg3[%c0_2, %c0_3], %4 {strides = array<i32>} : memref<512x512xf32, #tpu.memory_space<vmem>>, vector<512x512xf32>,
    return
  }
  func.func @transform_0(%arg0: i32) -> i32 {
    %c0_i32 = arith.constant 0 : i32
    %c0_i32_0 = arith.constant 0 : i32
    return %c0_i32 : i32
  }
  func.func @transform_1(%arg0: i32) -> (i32, i32) {
    %c0_i32 = arith.constant 0 : i32
    %c0_i32_0 = arith.constant 0 : i32
    return %arg0, %c0_i32 : i32, i32
  }
  func.func @transform_2(%arg0: i32) -> (i32, i32) {
    %c0_i32 = arith.constant 0 : i32
    %c0_i32_0 = arith.constant 0 : i32
    return %arg0, %c0_i32 : i32, i32
  }
}

</mosaic_0001>

<bundles_post_ra>
// kernel: tpu_custom_call.1
= control target key start
LH: loop header
LB: loop body
LE: loop exit
PB: predicated region body
PF: predicated region fallthrough
CT: control target
= control target key end

     0   :  { %s2121_s0 = inlined_call_operand.<no memory space> [shape: f32[1], index: 0, kind: input, shape index: {}]   ;;  %s2122_s1 = inlined_call_operand.hbm [shape: f32[1024,512], index: 1, kind: input, shape index: {}, may-alias: {1,2}]   ;;  %s2123_s2 = inlined_call_operand.hbm [shape: f32[1024,512], index: 2, kind: output, shape index: {}, may-alias: {1,2}]  }
   0x1   :  { %7 = sst [smem:[#allocation2]] %s2121_s0 }
   0x2   :  { %8 = vsyncpa [#allocation4], 0 }
   0x3   :  { %10 = vsyncpa [#allocation4 + $0x1], 0 }
   0x4   :  { %11 = vsyncpa [#allocation5], 0 }
   0x5   :  { %13 = vsyncpa [#allocation5 + $0x1], 0  ;;  %s1219_s11 = smov 0   ;;  %s1221_s12 = smov 0  }
   0x6   :  { %s1223_s13 = smov 0   ;;  %s1225_s14 = smov 0  }
   0x7 LB: > { %s1240_s0 = sadd.s32 4294967295, %s1195_s14   ;;  %s1029_s15 = sadd.s32 4294967294, %s1195_s14   ;;  %s1195_s14 = sphi %s1225_s14, %s2133_s14   ;;  %s1191_s13 = sphi %s1223_s13, %s2132_s13   ;;  %s1187_s12 = sphi %s1221_s12, %s2131_s12   ;;  %s1183_s11 = sphi %s1219_s11, %s2130_s11  }
   0x8   : > { %s1244_s16 = sadd.s32 1, %s1195_s14   ;;  %s47_s17 = sadd.s32 1, %s1191_s13 }
   0x9   : > { %s44_s18 = ssub.s32 %s1195_s14, %s1244_s16  ;;  %p54_p0 = scmp.ne.s32.totalorder %s1191_s13, %s1187_s12 }
   0xa   : > { %p45_p1 = scmp.eq.s32.totalorder %s44_s18, 0  ;;  %p55_p2 = scmp.eq.s32.totalorder %s1195_s14, 0 }
   0xb   : > { %p60_p3 = scmp.ne.s32.totalorder %s1187_s12, %s1183_s11  ;;  %p61_p4 = scmp.eq.s32.totalorder %s1240_s0, 0 }
   0xc   : > { %s1256_s19 = scalar_select %p45_p1, %s1191_s13, %s47_s17  }
   0xd   : > { %p1258_p5 = por %p55_p2, %p54_p0  ;;  %p1262_p6 = por %p61_p4, %p60_p3 }
   0xe   : > { %p84_p7 = scmp.eq.s32.totalorder %s1240_s0, 1  ;;  %p90_p8 = scmp.eq.s32.totalorder %s1029_s15, 1 }
   0xf   : > { %p1061_p10 = scmp.lt.s32.totalorder %s1195_s14, 2  ;;  %s113_s24 = sand.u32 1, %s1191_s13  }
  0x10   : > { %p1269_p11 = por %p84_p7, %p54_p0  ;;  %p1273_p12 = por %p90_p8, %p60_p3 }
  0x11   : > { %s1046_s25 = sshll.u32 %s1195_s14, 11  ;;  %s1032_s26 = sshll.u32 %s113_s24, 11 }
  0x12   : > { %s123_s29 = scalar_lea.hbm %s2122_s1, %s1046_s25  ;;  %s117_s3 = scalar_lea.vmem [#allocation3], %s1032_s26 }
  0x13   : > { %s124_s30 = sshll.u32 %s123_s29, 4  ;;  %s126_s4 = sshll.u32 %s117_s3, 4  ;;  %s125_s30 = int_to_ptr.hbm [resolvable:$true] %s124_s30  ;;  %s127_s4 = int_to_ptr.vmem [resolvable:$true] %s126_s4 }
  0x14   : > { %p1284_p13 = pnand %p1061_p10, %p1258_p5  ;;  %p1036_p0 = scmp.ge.s32.totalorder %s1195_s14, 1 }
  0x15   : > { %p134_p1 = scmp.lt.s32.totalorder %s1195_s14, 3  ;;  %s114_s6 = scalar_lea.sflag [#allocation4], %s113_s24 }
  0x16   : > { %s1099_s7 = sshra.s32 %s125_s30, 4  ;;  %p1103_p3 = pneg %p1284_p13  ;;  %s1100_s7 = int_to_ptr.hbm [resolvable:$true] %s1099_s7 }
  0x17   : > { %s1101_s8 = scalar_lea.hbm %s1100_s7, 2048  ;;  %s1106_s15 = scalar_lea.hbm %s2122_s1, 4096 }
  0x18   : > { %p1102_p2 = scmp.ne.s32.totalorder %s1100_s7, %s1101_s8  ;;  %p1107_p5 = scmp.lt.s32.totalorder %s1100_s7, %s2122_s1 }
  0x19   : > { %p1108_p8 = scmp.lt.s32.totalorder %s1106_s15, %s1101_s8 }
  0x1a   : > { %p1104_p4 = pnand %p1103_p3, %p1102_p2 }
  0x1b   : > { %p1109_p10 = por %p1108_p8, %p1107_p5 }
  0x1c   : > { %p1105_p7 = pneg %p1104_p4 }
  0x1e   : > { %p1110_p9 = pnand %p1109_p10, %p1105_p7 }
  0x20   : > { %1113 = shalt.err (!%p1110_p9)
}
  0x21   : > { %s1197_s20 = smov 512   ;;  %s1198_s24 = smov 32  }
  0x22   : > { %1056 = dma.hbm_to_vmem [thread:$0]  (!%p1284_p13), %s125_s30, 32768, %s127_s4, %s114_s6, %s1197_s20, %s1197_s20, %s1198_s24  }
  0x23   : > { %p135_p2 = pnand %p1036_p0, %p134_p1 }
  0x24   : > { %s1305_s25 = sand.u32 (!%p135_p2), 1, %s1187_s12  }
  0x25   : > { %138 = sbr.rel (%p135_p2) target bundleno = 313 (0x139), region = 28  ;;  %s1037_s26 = sshll.u32 (!%p135_p2), %s1305_s25, 11 }
  0x26   : > { %s141_s27 = scalar_lea.sflag (!%p135_p2), [#allocation4], %s1305_s25  ;;  %s1309_s28 = scalar_lea.vmem (!%p135_p2), [#allocation3], %s1037_s26 }
  0x2a   : > { %1174 = dma.done.wait (%p1262_p6), %s141_s27, 32768  }
  0x2b   : > { %1176 = vsyncadd (%p1262_p6), %s141_s27, 4294934528  ;;  %s424_s29 = sld [smem:[#allocation2]]  ;;  %v168_v0 = vld [vmem:[%s1309_s28] sm:$0xff]  ;;  %v169_v1 = vld [vmem:[%s1309_s28 + $0x8] sm:$0xff]  ;;  %s1328_s21 = scalar_lea.vmem [#allocation6], %s1037_s26 }
  0x2c   : > { %v170_v2 = vld [vmem:[%s1309_s28 + $0x10] sm:$0xff]  ;;  %v171_v3 = vld [vmem:[%s1309_s28 + $0x18] sm:$0xff]  ;;  %v172_v5 = vld [vmem:[%s1309_s28 + $0x20] sm:$0xff]  ;;  %s1048_s3 = sshll.u32 %s1240_s0, 11  ;;  %s953_s6 = sshll.u32 %s1328_s21, 4  ;;  %s954_s6 = int_to_ptr.vmem [resolvable:$true] %s953_s6 }
  0x2d   : > { %v173_v9 = vld [vmem:[%s1309_s28 + $0x28] sm:$0xff]  ;;  %v174_v11 = vld [vmem:[%s1309_s28 + $0x30] sm:$0xff]  ;;  %v175_v13 = vld [vmem:[%s1309_s28 + $0x38] sm:$0xff]  ;;  %s952_s0 = scalar_lea.hbm %s2123_s2, %s1048_s3  ;;  %s940_s8 = scalar_lea.sflag [#allocation5], %s1305_s25 }
  0x2e   : > { %v176_v15 = vld [vmem:[%s1309_s28 + $0x40] sm:$0xff]  ;;  %v177_v17 = vld [vmem:[%s1309_s28 + $0x48] sm:$0xff]  ;;  %v178_v19 = vld [vmem:[%s1309_s28 + $0x50] sm:$0xff]  ;;  %s955_s7 = sshll.u32 %s952_s0, 4  ;;  %s1149_s18 = scalar_lea.hbm %s2123_s2, 4096  ;;  %s956_s7 = int_to_ptr.hbm [resolvable:$true] %s955_s7 }
  0x2f   : > { %v179_v21 = vld [vmem:[%s1309_s28 + $0x58] sm:$0xff]  ;;  %v180_v23 = vld [vmem:[%s1309_s28 + $0x60] sm:$0xff]  ;;  %v181_v25 = vld [vmem:[%s1309_s28 + $0x68] sm:$0xff]  ;;  %s1143_s9 = sshra.s32 %s956_s7, 4  ;;  %s1144_s9 = int_to_ptr.hbm [resolvable:$true] %s1143_s9 }
  0x30   : > { %v182_v27 = vld [vmem:[%s1309_s28 + $0x70] sm:$0xff]  ;;  %v183_v29 = vld [vmem:[%s1309_s28 + $0x78] sm:$0xff]  ;;  %v184_v31 = vld [vmem:[%s1309_s28 + $0x80] sm:$0xff]  ;;  %s1145_s10 = scalar_lea.hbm %s1144_s9, 2048  ;;  %p1150_p0 = scmp.lt.s32.totalorder %s1144_s9, %s2123_s2 }
  0x31   : > { %s425_s30 = ssub.f32 0.0, %s424_s29  ;;  %v185_v33 = vld [vmem:[%s1309_s28 + $0x88] sm:$0xff]  ;;  %v186_v35 = vld [vmem:[%s1309_s28 + $0x90] sm:$0xff]  ;;  %v187_v37 = vld [vmem:[%s1309_s28 + $0x98] sm:$0xff]  ;;  %p1146_p6 = scmp.ne.s32.totalorder %s1144_s9, %s1145_s10 }
  0x32   : > { %v188_v39 = vld [vmem:[%s1309_s28 + $0xa0] sm:$0xff]  ;;  %v189_v41 = vld [vmem:[%s1309_s28 + $0xa8] sm:$0xff]  ;;  %v190_v43 = vld [vmem:[%s1309_s28 + $0xb0] sm:$0xff]  ;;  %p1151_p1 = scmp.lt.s32.totalorder %s1149_s18, %s1145_s10 }
  0x33   : > { %v1319_v4 = vstv %s425_s30  ;;  %v191_v45 = vld [vmem:[%s1309_s28 + $0xb8] sm:$0xff]  ;;  %v192_v47 = vld [vmem:[%s1309_s28 + $0xc0] sm:$0xff]  ;;  %v193_v49 = vld [vmem:[%s1309_s28 + $0xc8] sm:$0xff]  ;;  %p1147_p9 = pnand %p1146_p6, %p1269_p11 }
  0x34   : > { %v427_v6 = vmul.f32 %v1319_v4, %v168_v0  ;;  %v428_v7 = vmul.f32 %v1319_v4, %v169_v1  ;;  %v429_v8 = vmul.f32 %v1319_v4, %v170_v2  ;;  %v430_v10 = vmul.f32 %v1319_v4, %v171_v3  ;;  %v194_v51 = vld [vmem:[%s1309_s28 + $0xd0] sm:$0xff]  ;;  %v195_v53 = vld [vmem:[%s1309_s28 + $0xd8] sm:$0xff]  ;;  %v196_v55 = vld [vmem:[%s1309_s28 + $0xe0] sm:$0xff]  ;;  %p1152_p3 = por %p1151_p1, %p1150_p0 }
  0x35   : > { %v431_v12 = vmul.f32 %v1319_v4, %v172_v5  ;;  %v432_v14 = vmul.f32 %v1319_v4, %v173_v9  ;;  %v433_v16 = vmul.f32 %v1319_v4, %v174_v11  ;;  %v434_v18 = vmul.f32 %v1319_v4, %v175_v13  ;;  %v197_v57 = vld [vmem:[%s1309_s28 + $0xe8] sm:$0xff]  ;;  %v198_v59 = vld [vmem:[%s1309_s28 + $0xf0] sm:$0xff]  ;;  %v199_v61 = vld [vmem:[%s1309_s28 + $0xf8] sm:$0xff]  ;;  %p1148_p13 = pneg %p1147_p9 }
  0x36   : > { %683 = vst [vmem:[%s1328_s21] sm:$0xff] %v427_v6  ;;  %v435_v20 = vmul.f32 %v1319_v4, %v176_v15  ;;  %v436_v22 = vmul.f32 %v1319_v4, %v177_v17  ;;  %v437_v24 = vmul.f32 %v1319_v4, %v178_v19  ;;  %v438_v26 = vmul.f32 %v1319_v4, %v179_v21  ;;  %v200_v63 = vld [vmem:[%s1309_s28 + $0x100] sm:$0xff]  ;;  %v201_v1 = vld [vmem:[%s1309_s28 + $0x108] sm:$0xff]  ;;  %v202_v3 = vld [vmem:[%s1309_s28 + $0x110] sm:$0xff] }
  0x37   : > { %684 = vst [vmem:[%s1328_s21 + $0x8] sm:$0xff] %v428_v7  ;;  %v439_v28 = vmul.f32 %v1319_v4, %v180_v23  ;;  %v440_v30 = vmul.f32 %v1319_v4, %v181_v25  ;;  %v441_v32 = vmul.f32 %v1319_v4, %v182_v27  ;;  %v442_v34 = vmul.f32 %v1319_v4, %v183_v29  ;;  %v203_v6 = vld [vmem:[%s1309_s28 + $0x118] sm:$0xff]  ;;  %p1153_p4 = pnand %p1152_p3, %p1148_p13 }
  0x38   : > { %685 = vst [vmem:[%s1328_s21 + $0x10] sm:$0xff] %v429_v8  ;;  %v443_v36 = vmul.f32 %v1319_v4, %v184_v31  ;;  %v444_v38 = vmul.f32 %v1319_v4, %v185_v33  ;;  %v445_v40 = vmul.f32 %v1319_v4, %v186_v35  ;;  %v446_v42 = vmul.f32 %v1319_v4, %v187_v37  ;;  %v204_v8 = vld [vmem:[%s1309_s28 + $0x120] sm:$0xff] }
  0x39   : > { %686 = vst [vmem:[%s1328_s21 + $0x18] sm:$0xff] %v430_v10  ;;  %v447_v44 = vmul.f32 %v1319_v4, %v188_v39  ;;  %v448_v46 = vmul.f32 %v1319_v4, %v189_v41  ;;  %v449_v48 = vmul.f32 %v1319_v4, %v190_v43  ;;  %v450_v50 = vmul.f32 %v1319_v4, %v191_v45  ;;  %v205_v10 = vld [vmem:[%s1309_s28 + $0x128] sm:$0xff] }
  0x3a   : > { %687 = vst [vmem:[%s1328_s21 + $0x20] sm:$0xff] %v431_v12  ;;  %v451_v52 = vmul.f32 %v1319_v4, %v192_v47  ;;  %v452_v54 = vmul.f32 %v1319_v4, %v193_v49  ;;  %v453_v56 = vmul.f32 %v1319_v4, %v194_v51  ;;  %v454_v58 = vmul.f32 %v1319_v4, %v195_v53  ;;  %v206_v12 = vld [vmem:[%s1309_s28 + $0x130] sm:$0xff] }
  0x3b   : > { %688 = vst [vmem:[%s1328_s21 + $0x28] sm:$0xff] %v432_v14  ;;  %v455_v60 = vmul.f32 %v1319_v4, %v196_v55  ;;  %v456_v62 = vmul.f32 %v1319_v4, %v197_v57  ;;  %v457_v0 = vmul.f32 %v1319_v4, %v198_v59  ;;  %v458_v2 = vmul.f32 %v1319_v4, %v199_v61  ;;  %v207_v14 = vld [vmem:[%s1309_s28 + $0x138] sm:$0xff] }
  0x3c   : > { %689 = vst [vmem:[%s1328_s21 + $0x30] sm:$0xff] %v433_v16  ;;  %v459_v5 = vmul.f32 %v1319_v4, %v200_v63  ;;  %v460_v7 = vmul.f32 %v1319_v4, %v201_v1  ;;  %v461_v9 = vmul.f32 %v1319_v4, %v202_v3  ;;  %v462_v11 = vmul.f32 %v1319_v4, %v203_v6  ;;  %v208_v16 = vld [vmem:[%s1309_s28 + $0x140] sm:$0xff] }
  0x3d   : > { %690 = vst [vmem:[%s1328_s21 + $0x38] sm:$0xff] %v434_v18  ;;  %v463_v13 = vmul.f32 %v1319_v4, %v204_v8  ;;  %v464_v15 = vmul.f32 %v1319_v4, %v205_v10  ;;  %v465_v17 = vmul.f32 %v1319_v4, %v206_v12  ;;  %v209_v18 = vld [vmem:[%s1309_s28 + $0x148] sm:$0xff]  ;;  %v466_v19 = vmul.f32 %v1319_v4, %v207_v14 }
  0x3e   : > { %691 = vst [vmem:[%s1328_s21 + $0x40] sm:$0xff] %v435_v20  ;;  %v210_v20 = vld [vmem:[%s1309_s28 + $0x150] sm:$0xff]  ;;  %v467_v21 = vmul.f32 %v1319_v4, %v208_v16  ;;  %v468_v23 = vmul.f32 %v1319_v4, %v209_v18 }
  0x3f   : > { %692 = vst [vmem:[%s1328_s21 + $0x48] sm:$0xff] %v436_v22  ;;  %v211_v22 = vld [vmem:[%s1309_s28 + $0x158] sm:$0xff]  ;;  %v469_v25 = vmul.f32 %v1319_v4, %v210_v20 }
  0x40   : > { %693 = vst [vmem:[%s1328_s21 + $0x50] sm:$0xff] %v437_v24  ;;  %v212_v24 = vld [vmem:[%s1309_s28 + $0x160] sm:$0xff]  ;;  %v470_v27 = vmul.f32 %v1319_v4, %v211_v22 }
  0x41   : > { %694 = vst [vmem:[%s1328_s21 + $0x58] sm:$0xff] %v438_v26  ;;  %v213_v26 = vld [vmem:[%s1309_s28 + $0x168] sm:$0xff]  ;;  %v471_v29 = vmul.f32 %v1319_v4, %v212_v24 }
  0x42   : > { %695 = vst [vmem:[%s1328_s21 + $0x60] sm:$0xff] %v439_v28  ;;  %v214_v28 = vld [vmem:[%s1309_s28 + $0x170] sm:$0xff]  ;;  %v472_v31 = vmul.f32 %v1319_v4, %v213_v26 }
  0x43   : > { %696 = vst [vmem:[%s1328_s21 + $0x68] sm:$0xff] %v440_v30  ;;  %v215_v30 = vld [vmem:[%s1309_s28 + $0x178] sm:$0xff]  ;;  %v473_v33 = vmul.f32 %v1319_v4, %v214_v28 }
  0x44   : > { %697 = vst [vmem:[%s1328_s21 + $0x70] sm:$0xff] %v441_v32  ;;  %v216_v32 = vld [vmem:[%s1309_s28 + $0x180] sm:$0xff]  ;;  %v474_v35 = vmul.f32 %v1319_v4, %v215_v30 }
  0x45   : > { %698 = vst [vmem:[%s1328_s21 + $0x78] sm:$0xff] %v442_v34  ;;  %v217_v34 = vld [vmem:[%s1309_s28 + $0x188] sm:$0xff]  ;;  %v475_v37 = vmul.f32 %v1319_v4, %v216_v32 }
  0x46   : > { %699 = vst [vmem:[%s1328_s21 + $0x80] sm:$0xff] %v443_v36  ;;  %v218_v36 = vld [vmem:[%s1309_s28 + $0x190] sm:$0xff]  ;;  %v476_v39 = vmul.f32 %v1319_v4, %v217_v34 }
  0x47   : > { %700 = vst [vmem:[%s1328_s21 + $0x88] sm:$0xff] %v444_v38  ;;  %v219_v38 = vld [vmem:[%s1309_s28 + $0x198] sm:$0xff]  ;;  %v477_v41 = vmul.f32 %v1319_v4, %v218_v36 }
  0x48   : > { %701 = vst [vmem:[%s1328_s21 + $0x90] sm:$0xff] %v445_v40  ;;  %v220_v40 = vld [vmem:[%s1309_s28 + $0x1a0] sm:$0xff]  ;;  %v478_v43 = vmul.f32 %v1319_v4, %v219_v38 }
  0x49   : > { %702 = vst [vmem:[%s1328_s21 + $0x98] sm:$0xff] %v446_v42  ;;  %v221_v42 = vld [vmem:[%s1309_s28 + $0x1a8] sm:$0xff]  ;;  %v479_v45 = vmul.f32 %v1319_v4, %v220_v40 }
  0x4a   : > { %703 = vst [vmem:[%s1328_s21 + $0xa0] sm:$0xff] %v447_v44  ;;  %v222_v44 = vld [vmem:[%s1309_s28 + $0x1b0] sm:$0xff]  ;;  %v480_v47 = vmul.f32 %v1319_v4, %v221_v42 }
  0x4b   : > { %704 = vst [vmem:[%s1328_s21 + $0xa8] sm:$0xff] %v448_v46  ;;  %v223_v46 = vld [vmem:[%s1309_s28 + $0x1b8] sm:$0xff]  ;;  %v481_v49 = vmul.f32 %v1319_v4, %v222_v44 }
  0x4c   : > { %705 = vst [vmem:[%s1328_s21 + $0xb0] sm:$0xff] %v449_v48  ;;  %v224_v48 = vld [vmem:[%s1309_s28 + $0x1c0] sm:$0xff]  ;;  %v482_v51 = vmul.f32 %v1319_v4, %v223_v46 }
  0x4d   : > { %706 = vst [vmem:[%s1328_s21 + $0xb8] sm:$0xff] %v450_v50  ;;  %v225_v50 = vld [vmem:[%s1309_s28 + $0x1c8] sm:$0xff]  ;;  %v483_v53 = vmul.f32 %v1319_v4, %v224_v48 }
  0x4e   : > { %707 = vst [vmem:[%s1328_s21 + $0xc0] sm:$0xff] %v451_v52  ;;  %v226_v52 = vld [vmem:[%s1309_s28 + $0x1d0] sm:$0xff]  ;;  %v484_v55 = vmul.f32 %v1319_v4, %v225_v50 }
  0x4f   : > { %708 = vst [vmem:[%s1328_s21 + $0xc8] sm:$0xff] %v452_v54  ;;  %v227_v54 = vld [vmem:[%s1309_s28 + $0x1d8] sm:$0xff]  ;;  %v485_v57 = vmul.f32 %v1319_v4, %v226_v52 }
  0x50   : > { %709 = vst [vmem:[%s1328_s21 + $0xd0] sm:$0xff] %v453_v56  ;;  %v228_v56 = vld [vmem:[%s1309_s28 + $0x1e0] sm:$0xff]  ;;  %v486_v59 = vmul.f32 %v1319_v4, %v227_v54 }
  0x51   : > { %710 = vst [vmem:[%s1328_s21 + $0xd8] sm:$0xff] %v454_v58  ;;  %v229_v58 = vld [vmem:[%s1309_s28 + $0x1e8] sm:$0xff]  ;;  %v487_v61 = vmul.f32 %v1319_v4, %v228_v56 }
  0x52   : > { %711 = vst [vmem:[%s1328_s21 + $0xe0] sm:$0xff] %v455_v60  ;;  %v230_v60 = vld [vmem:[%s1309_s28 + $0x1f0] sm:$0xff]  ;;  %v488_v63 = vmul.f32 %v1319_v4, %v229_v58 }
  0x53   : > { %712 = vst [vmem:[%s1328_s21 + $0xe8] sm:$0xff] %v456_v62  ;;  %v231_v62 = vld [vmem:[%s1309_s28 + $0x1f8] sm:$0xff]  ;;  %v489_v1 = vmul.f32 %v1319_v4, %v230_v60 }
  0x54   : > { %713 = vst [vmem:[%s1328_s21 + $0xf0] sm:$0xff] %v457_v0  ;;  %v232_v0 = vld [vmem:[%s1309_s28 + $0x200] sm:$0xff]  ;;  %v490_v3 = vmul.f32 %v1319_v4, %v231_v62 }
  0x55   : > { %714 = vst [vmem:[%s1328_s21 + $0xf8] sm:$0xff] %v458_v2  ;;  %v233_v2 = vld [vmem:[%s1309_s28 + $0x208] sm:$0xff]  ;;  %v491_v6 = vmul.f32 %v1319_v4, %v232_v0 }
  0x56   : > { %715 = vst [vmem:[%s1328_s21 + $0x100] sm:$0xff] %v459_v5  ;;  %v234_v5 = vld [vmem:[%s1309_s28 + $0x210] sm:$0xff]  ;;  %v492_v8 = vmul.f32 %v1319_v4, %v233_v2 }
  0x57   : > { %716 = vst [vmem:[%s1328_s21 + $0x108] sm:$0xff] %v460_v7  ;;  %v235_v7 = vld [vmem:[%s1309_s28 + $0x218] sm:$0xff]  ;;  %v493_v10 = vmul.f32 %v1319_v4, %v234_v5 }
  0x58   : > { %717 = vst [vmem:[%s1328_s21 + $0x110] sm:$0xff] %v461_v9  ;;  %v236_v9 = vld [vmem:[%s1309_s28 + $0x220] sm:$0xff]  ;;  %v494_v12 = vmul.f32 %v1319_v4, %v235_v7 }
  0x59   : > { %718 = vst [vmem:[%s1328_s21 + $0x118] sm:$0xff] %v462_v11  ;;  %v237_v11 = vld [vmem:[%s1309_s28 + $0x228] sm:$0xff]  ;;  %v495_v14 = vmul.f32 %v1319_v4, %v236_v9 }
  0x5a   : > { %719 = vst [vmem:[%s1328_s21 + $0x120] sm:$0xff] %v463_v13  ;;  %v238_v13 = vld [vmem:[%s1309_s28 + $0x230] sm:$0xff]  ;;  %v496_v16 = vmul.f32 %v1319_v4, %v237_v11 }
  0x5b   : > { %720 = vst [vmem:[%s1328_s21 + $0x128] sm:$0xff] %v464_v15  ;;  %v239_v15 = vld [vmem:[%s1309_s28 + $0x238] sm:$0xff]  ;;  %v497_v18 = vmul.f32 %v1319_v4, %v238_v13 }
  0x5c   : > { %721 = vst [vmem:[%s1328_s21 + $0x130] sm:$0xff] %v465_v17  ;;  %v240_v17 = vld [vmem:[%s1309_s28 + $0x240] sm:$0xff]  ;;  %v498_v20 = vmul.f32 %v1319_v4, %v239_v15 }
  0x5d   : > { %722 = vst [vmem:[%s1328_s21 + $0x138] sm:$0xff] %v466_v19  ;;  %v241_v19 = vld [vmem:[%s1309_s28 + $0x248] sm:$0xff]  ;;  %v499_v22 = vmul.f32 %v1319_v4, %v240_v17 }
  0x5e   : > { %723 = vst [vmem:[%s1328_s21 + $0x140] sm:$0xff] %v467_v21  ;;  %v242_v21 = vld [vmem:[%s1309_s28 + $0x250] sm:$0xff]  ;;  %v500_v24 = vmul.f32 %v1319_v4, %v241_v19 }
  0x5f   : > { %724 = vst [vmem:[%s1328_s21 + $0x148] sm:$0xff] %v468_v23  ;;  %v243_v23 = vld [vmem:[%s1309_s28 + $0x258] sm:$0xff]  ;;  %v501_v26 = vmul.f32 %v1319_v4, %v242_v21 }
  0x60   : > { %725 = vst [vmem:[%s1328_s21 + $0x150] sm:$0xff] %v469_v25  ;;  %v244_v25 = vld [vmem:[%s1309_s28 + $0x260] sm:$0xff]  ;;  %v502_v28 = vmul.f32 %v1319_v4, %v243_v23 }
  0x61   : > { %726 = vst [vmem:[%s1328_s21 + $0x158] sm:$0xff] %v470_v27  ;;  %v245_v27 = vld [vmem:[%s1309_s28 + $0x268] sm:$0xff]  ;;  %v503_v30 = vmul.f32 %v1319_v4, %v244_v25 }
  0x62   : > { %727 = vst [vmem:[%s1328_s21 + $0x160] sm:$0xff] %v471_v29  ;;  %v246_v29 = vld [vmem:[%s1309_s28 + $0x270] sm:$0xff]  ;;  %v504_v32 = vmul.f32 %v1319_v4, %v245_v27 }
  0x63   : > { %728 = vst [vmem:[%s1328_s21 + $0x168] sm:$0xff] %v472_v31  ;;  %v247_v31 = vld [vmem:[%s1309_s28 + $0x278] sm:$0xff]  ;;  %v505_v34 = vmul.f32 %v1319_v4, %v246_v29 }
  0x64   : > { %729 = vst [vmem:[%s1328_s21 + $0x170] sm:$0xff] %v473_v33  ;;  %v248_v33 = vld [vmem:[%s1309_s28 + $0x280] sm:$0xff]  ;;  %v506_v36 = vmul.f32 %v1319_v4, %v247_v31 }
  0x65   : > { %730 = vst [vmem:[%s1328_s21 + $0x178] sm:$0xff] %v474_v35  ;;  %v249_v35 = vld [vmem:[%s1309_s28 + $0x288] sm:$0xff]  ;;  %v507_v38 = vmul.f32 %v1319_v4, %v248_v33 }
  0x66   : > { %731 = vst [vmem:[%s1328_s21 + $0x180] sm:$0xff] %v475_v37  ;;  %v250_v37 = vld [vmem:[%s1309_s28 + $0x290] sm:$0xff]  ;;  %v508_v40 = vmul.f32 %v1319_v4, %v249_v35 }
  0x67   : > { %732 = vst [vmem:[%s1328_s21 + $0x188] sm:$0xff] %v476_v39  ;;  %v251_v39 = vld [vmem:[%s1309_s28 + $0x298] sm:$0xff]  ;;  %v509_v42 = vmul.f32 %v1319_v4, %v250_v37 }
  0x68   : > { %733 = vst [vmem:[%s1328_s21 + $0x190] sm:$0xff] %v477_v41  ;;  %v252_v41 = vld [vmem:[%s1309_s28 + $0x2a0] sm:$0xff]  ;;  %v510_v44 = vmul.f32 %v1319_v4, %v251_v39 }
  0x69   : > { %734 = vst [vmem:[%s1328_s21 + $0x198] sm:$0xff] %v478_v43  ;;  %v253_v43 = vld [vmem:[%s1309_s28 + $0x2a8] sm:$0xff]  ;;  %v511_v46 = vmul.f32 %v1319_v4, %v252_v41 }
  0x6a   : > { %735 = vst [vmem:[%s1328_s21 + $0x1a0] sm:$0xff] %v479_v45  ;;  %v254_v45 = vld [vmem:[%s1309_s28 + $0x2b0] sm:$0xff]  ;;  %v512_v48 = vmul.f32 %v1319_v4, %v253_v43 }
  0x6b   : > { %736 = vst [vmem:[%s1328_s21 + $0x1a8] sm:$0xff] %v480_v47  ;;  %v255_v47 = vld [vmem:[%s1309_s28 + $0x2b8] sm:$0xff]  ;;  %v513_v50 = vmul.f32 %v1319_v4, %v254_v45 }
  0x6c   : > { %737 = vst [vmem:[%s1328_s21 + $0x1b0] sm:$0xff] %v481_v49  ;;  %v256_v49 = vld [vmem:[%s1309_s28 + $0x2c0] sm:$0xff]  ;;  %v514_v52 = vmul.f32 %v1319_v4, %v255_v47 }
  0x6d   : > { %738 = vst [vmem:[%s1328_s21 + $0x1b8] sm:$0xff] %v482_v51  ;;  %v257_v51 = vld [vmem:[%s1309_s28 + $0x2c8] sm:$0xff]  ;;  %v515_v54 = vmul.f32 %v1319_v4, %v256_v49 }
  0x6e   : > { %739 = vst [vmem:[%s1328_s21 + $0x1c0] sm:$0xff] %v483_v53  ;;  %v258_v53 = vld [vmem:[%s1309_s28 + $0x2d0] sm:$0xff]  ;;  %v516_v56 = vmul.f32 %v1319_v4, %v257_v51 }
  0x6f   : > { %740 = vst [vmem:[%s1328_s21 + $0x1c8] sm:$0xff] %v484_v55  ;;  %v259_v55 = vld [vmem:[%s1309_s28 + $0x2d8] sm:$0xff]  ;;  %v517_v58 = vmul.f32 %v1319_v4, %v258_v53 }
  0x70   : > { %741 = vst [vmem:[%s1328_s21 + $0x1d0] sm:$0xff] %v485_v57  ;;  %v260_v57 = vld [vmem:[%s1309_s28 + $0x2e0] sm:$0xff]  ;;  %v518_v60 = vmul.f32 %v1319_v4, %v259_v55 }
  0x71   : > { %742 = vst [vmem:[%s1328_s21 + $0x1d8] sm:$0xff] %v486_v59  ;;  %v261_v59 = vld [vmem:[%s1309_s28 + $0x2e8] sm:$0xff]  ;;  %v519_v62 = vmul.f32 %v1319_v4, %v260_v57 }
  0x72   : > { %743 = vst [vmem:[%s1328_s21 + $0x1e0] sm:$0xff] %v487_v61  ;;  %v262_v61 = vld [vmem:[%s1309_s28 + $0x2f0] sm:$0xff]  ;;  %v520_v0 = vmul.f32 %v1319_v4, %v261_v59 }
  0x73   : > { %744 = vst [vmem:[%s1328_s21 + $0x1e8] sm:$0xff] %v488_v63  ;;  %v263_v63 = vld [vmem:[%s1309_s28 + $0x2f8] sm:$0xff]  ;;  %v521_v2 = vmul.f32 %v1319_v4, %v262_v61 }
  0x74   : > { %745 = vst [vmem:[%s1328_s21 + $0x1f0] sm:$0xff] %v489_v1  ;;  %v264_v1 = vld [vmem:[%s1309_s28 + $0x300] sm:$0xff]  ;;  %v522_v5 = vmul.f32 %v1319_v4, %v263_v63 }
  0x75   : > { %746 = vst [vmem:[%s1328_s21 + $0x1f8] sm:$0xff] %v490_v3  ;;  %v265_v3 = vld [vmem:[%s1309_s28 + $0x308] sm:$0xff]  ;;  %v523_v7 = vmul.f32 %v1319_v4, %v264_v1 }
  0x76   : > { %747 = vst [vmem:[%s1328_s21 + $0x200] sm:$0xff] %v491_v6  ;;  %v266_v6 = vld [vmem:[%s1309_s28 + $0x310] sm:$0xff]  ;;  %v524_v9 = vmul.f32 %v1319_v4, %v265_v3 }
  0x77   : > { %748 = vst [vmem:[%s1328_s21 + $0x208] sm:$0xff] %v492_v8  ;;  %v267_v8 = vld [vmem:[%s1309_s28 + $0x318] sm:$0xff]  ;;  %v525_v11 = vmul.f32 %v1319_v4, %v266_v6 }
  0x78   : > { %749 = vst [vmem:[%s1328_s21 + $0x210] sm:$0xff] %v493_v10  ;;  %v268_v10 = vld [vmem:[%s1309_s28 + $0x320] sm:$0xff]  ;;  %v526_v13 = vmul.f32 %v1319_v4, %v267_v8 }
  0x79   : > { %750 = vst [vmem:[%s1328_s21 + $0x218] sm:$0xff] %v494_v12  ;;  %v269_v12 = vld [vmem:[%s1309_s28 + $0x328] sm:$0xff]  ;;  %v527_v15 = vmul.f32 %v1319_v4, %v268_v10 }
  0x7a   : > { %751 = vst [vmem:[%s1328_s21 + $0x220] sm:$0xff] %v495_v14  ;;  %v270_v14 = vld [vmem:[%s1309_s28 + $0x330] sm:$0xff]  ;;  %v528_v17 = vmul.f32 %v1319_v4, %v269_v12 }
  0x7b   : > { %752 = vst [vmem:[%s1328_s21 + $0x228] sm:$0xff] %v496_v16  ;;  %v271_v16 = vld [vmem:[%s1309_s28 + $0x338] sm:$0xff]  ;;  %v529_v19 = vmul.f32 %v1319_v4, %v270_v14 }
  0x7c   : > { %753 = vst [vmem:[%s1328_s21 + $0x230] sm:$0xff] %v497_v18  ;;  %v272_v18 = vld [vmem:[%s1309_s28 + $0x340] sm:$0xff]  ;;  %v530_v21 = vmul.f32 %v1319_v4, %v271_v16 }
  0x7d   : > { %754 = vst [vmem:[%s1328_s21 + $0x238] sm:$0xff] %v498_v20  ;;  %v273_v20 = vld [vmem:[%s1309_s28 + $0x348] sm:$0xff]  ;;  %v531_v23 = vmul.f32 %v1319_v4, %v272_v18 }
  0x7e   : > { %755 = vst [vmem:[%s1328_s21 + $0x240] sm:$0xff] %v499_v22  ;;  %v274_v22 = vld [vmem:[%s1309_s28 + $0x350] sm:$0xff]  ;;  %v532_v25 = vmul.f32 %v1319_v4, %v273_v20 }
  0x7f   : > { %756 = vst [vmem:[%s1328_s21 + $0x248] sm:$0xff] %v500_v24  ;;  %v275_v24 = vld [vmem:[%s1309_s28 + $0x358] sm:$0xff]  ;;  %v533_v27 = vmul.f32 %v1319_v4, %v274_v22 }
  0x80   : > { %757 = vst [vmem:[%s1328_s21 + $0x250] sm:$0xff] %v501_v26  ;;  %v276_v26 = vld [vmem:[%s1309_s28 + $0x360] sm:$0xff]  ;;  %v534_v29 = vmul.f32 %v1319_v4, %v275_v24 }
  0x81   : > { %758 = vst [vmem:[%s1328_s21 + $0x258] sm:$0xff] %v502_v28  ;;  %v277_v28 = vld [vmem:[%s1309_s28 + $0x368] sm:$0xff]  ;;  %v535_v31 = vmul.f32 %v1319_v4, %v276_v26 }
  0x82   : > { %759 = vst [vmem:[%s1328_s21 + $0x260] sm:$0xff] %v503_v30  ;;  %v278_v30 = vld [vmem:[%s1309_s28 + $0x370] sm:$0xff]  ;;  %v536_v33 = vmul.f32 %v1319_v4, %v277_v28 }
  0x83   : > { %760 = vst [vmem:[%s1328_s21 + $0x268] sm:$0xff] %v504_v32  ;;  %v279_v32 = vld [vmem:[%s1309_s28 + $0x378] sm:$0xff]  ;;  %v537_v35 = vmul.f32 %v1319_v4, %v278_v30 }
  0x84   : > { %761 = vst [vmem:[%s1328_s21 + $0x270] sm:$0xff] %v505_v34  ;;  %v280_v34 = vld [vmem:[%s1309_s28 + $0x380] sm:$0xff]  ;;  %v538_v37 = vmul.f32 %v1319_v4, %v279_v32 }
  0x85   : > { %762 = vst [vmem:[%s1328_s21 + $0x278] sm:$0xff] %v506_v36  ;;  %v281_v36 = vld [vmem:[%s1309_s28 + $0x388] sm:$0xff]  ;;  %v539_v39 = vmul.f32 %v1319_v4, %v280_v34 }
  0x86   : > { %763 = vst [vmem:[%s1328_s21 + $0x280] sm:$0xff] %v507_v38  ;;  %v282_v38 = vld [vmem:[%s1309_s28 + $0x390] sm:$0xff]  ;;  %v540_v41 = vmul.f32 %v1319_v4, %v281_v36 }
  0x87   : > { %764 = vst [vmem:[%s1328_s21 + $0x288] sm:$0xff] %v508_v40  ;;  %v283_v40 = vld [vmem:[%s1309_s28 + $0x398] sm:$0xff]  ;;  %v541_v43 = vmul.f32 %v1319_v4, %v282_v38 }
  0x88   : > { %765 = vst [vmem:[%s1328_s21 + $0x290] sm:$0xff] %v509_v42  ;;  %v284_v42 = vld [vmem:[%s1309_s28 + $0x3a0] sm:$0xff]  ;;  %v542_v45 = vmul.f32 %v1319_v4, %v283_v40 }
  0x89   : > { %766 = vst [vmem:[%s1328_s21 + $0x298] sm:$0xff] %v510_v44  ;;  %v285_v44 = vld [vmem:[%s1309_s28 + $0x3a8] sm:$0xff]  ;;  %v543_v47 = vmul.f32 %v1319_v4, %v284_v42 }
  0x8a   : > { %767 = vst [vmem:[%s1328_s21 + $0x2a0] sm:$0xff] %v511_v46  ;;  %v286_v46 = vld [vmem:[%s1309_s28 + $0x3b0] sm:$0xff]  ;;  %v544_v49 = vmul.f32 %v1319_v4, %v285_v44 }
  0x8b   : > { %768 = vst [vmem:[%s1328_s21 + $0x2a8] sm:$0xff] %v512_v48  ;;  %v287_v48 = vld [vmem:[%s1309_s28 + $0x3b8] sm:$0xff]  ;;  %v545_v51 = vmul.f32 %v1319_v4, %v286_v46 }
  0x8c   : > { %769 = vst [vmem:[%s1328_s21 + $0x2b0] sm:$0xff] %v513_v50  ;;  %v288_v50 = vld [vmem:[%s1309_s28 + $0x3c0] sm:$0xff]  ;;  %v546_v53 = vmul.f32 %v1319_v4, %v287_v48 }
  0x8d   : > { %770 = vst [vmem:[%s1328_s21 + $0x2b8] sm:$0xff] %v514_v52  ;;  %v289_v52 = vld [vmem:[%s1309_s28 + $0x3c8] sm:$0xff]  ;;  %v547_v55 = vmul.f32 %v1319_v4, %v288_v50 }
  0x8e   : > { %771 = vst [vmem:[%s1328_s21 + $0x2c0] sm:$0xff] %v515_v54  ;;  %v290_v54 = vld [vmem:[%s1309_s28 + $0x3d0] sm:$0xff]  ;;  %v548_v57 = vmul.f32 %v1319_v4, %v289_v52 }
  0x8f   : > { %772 = vst [vmem:[%s1328_s21 + $0x2c8] sm:$0xff] %v516_v56  ;;  %v291_v56 = vld [vmem:[%s1309_s28 + $0x3d8] sm:$0xff]  ;;  %v549_v59 = vmul.f32 %v1319_v4, %v290_v54 }
  0x90   : > { %773 = vst [vmem:[%s1328_s21 + $0x2d0] sm:$0xff] %v517_v58  ;;  %v292_v58 = vld [vmem:[%s1309_s28 + $0x3e0] sm:$0xff]  ;;  %v550_v61 = vmul.f32 %v1319_v4, %v291_v56 }
  0x91   : > { %774 = vst [vmem:[%s1328_s21 + $0x2d8] sm:$0xff] %v518_v60  ;;  %v293_v60 = vld [vmem:[%s1309_s28 + $0x3e8] sm:$0xff]  ;;  %v551_v63 = vmul.f32 %v1319_v4, %v292_v58 }
  0x92   : > { %775 = vst [vmem:[%s1328_s21 + $0x2e0] sm:$0xff] %v519_v62  ;;  %v294_v62 = vld [vmem:[%s1309_s28 + $0x3f0] sm:$0xff]  ;;  %v552_v1 = vmul.f32 %v1319_v4, %v293_v60 }
  0x93   : > { %776 = vst [vmem:[%s1328_s21 + $0x2e8] sm:$0xff] %v520_v0  ;;  %v295_v0 = vld [vmem:[%s1309_s28 + $0x3f8] sm:$0xff]  ;;  %v553_v3 = vmul.f32 %v1319_v4, %v294_v62 }
  0x94   : > { %777 = vst [vmem:[%s1328_s21 + $0x2f0] sm:$0xff] %v521_v2  ;;  %v296_v2 = vld [vmem:[%s1309_s28 + $0x400] sm:$0xff]  ;;  %v554_v6 = vmul.f32 %v1319_v4, %v295_v0 }
  0x95   : > { %778 = vst [vmem:[%s1328_s21 + $0x2f8] sm:$0xff] %v522_v5  ;;  %v297_v5 = vld [vmem:[%s1309_s28 + $0x408] sm:$0xff]  ;;  %v555_v8 = vmul.f32 %v1319_v4, %v296_v2 }
  0x96   : > { %779 = vst [vmem:[%s1328_s21 + $0x300] sm:$0xff] %v523_v7  ;;  %v298_v7 = vld [vmem:[%s1309_s28 + $0x410] sm:$0xff]  ;;  %v556_v10 = vmul.f32 %v1319_v4, %v297_v5 }
  0x97   : > { %780 = vst [vmem:[%s1328_s21 + $0x308] sm:$0xff] %v524_v9  ;;  %v299_v9 = vld [vmem:[%s1309_s28 + $0x418] sm:$0xff]  ;;  %v557_v12 = vmul.f32 %v1319_v4, %v298_v7 }
  0x98   : > { %781 = vst [vmem:[%s1328_s21 + $0x310] sm:$0xff] %v525_v11  ;;  %v300_v11 = vld [vmem:[%s1309_s28 + $0x420] sm:$0xff]  ;;  %v558_v14 = vmul.f32 %v1319_v4, %v299_v9 }
  0x99   : > { %782 = vst [vmem:[%s1328_s21 + $0x318] sm:$0xff] %v526_v13  ;;  %v301_v13 = vld [vmem:[%s1309_s28 + $0x428] sm:$0xff]  ;;  %v559_v16 = vmul.f32 %v1319_v4, %v300_v11 }
  0x9a   : > { %783 = vst [vmem:[%s1328_s21 + $0x320] sm:$0xff] %v527_v15  ;;  %v302_v15 = vld [vmem:[%s1309_s28 + $0x430] sm:$0xff]  ;;  %v560_v18 = vmul.f32 %v1319_v4, %v301_v13 }
  0x9b   : > { %784 = vst [vmem:[%s1328_s21 + $0x328] sm:$0xff] %v528_v17  ;;  %v303_v17 = vld [vmem:[%s1309_s28 + $0x438] sm:$0xff]  ;;  %v561_v20 = vmul.f32 %v1319_v4, %v302_v15 }
  0x9c   : > { %785 = vst [vmem:[%s1328_s21 + $0x330] sm:$0xff] %v529_v19  ;;  %v304_v19 = vld [vmem:[%s1309_s28 + $0x440] sm:$0xff]  ;;  %v562_v22 = vmul.f32 %v1319_v4, %v303_v17 }
  0x9d   : > { %786 = vst [vmem:[%s1328_s21 + $0x338] sm:$0xff] %v530_v21  ;;  %v305_v21 = vld [vmem:[%s1309_s28 + $0x448] sm:$0xff]  ;;  %v563_v24 = vmul.f32 %v1319_v4, %v304_v19 }
  0x9e   : > { %787 = vst [vmem:[%s1328_s21 + $0x340] sm:$0xff] %v531_v23  ;;  %v306_v23 = vld [vmem:[%s1309_s28 + $0x450] sm:$0xff]  ;;  %v564_v26 = vmul.f32 %v1319_v4, %v305_v21 }
  0x9f   : > { %788 = vst [vmem:[%s1328_s21 + $0x348] sm:$0xff] %v532_v25  ;;  %v307_v25 = vld [vmem:[%s1309_s28 + $0x458] sm:$0xff]  ;;  %v565_v28 = vmul.f32 %v1319_v4, %v306_v23 }
  0xa0   : > { %789 = vst [vmem:[%s1328_s21 + $0x350] sm:$0xff] %v533_v27  ;;  %v308_v27 = vld [vmem:[%s1309_s28 + $0x460] sm:$0xff]  ;;  %v566_v30 = vmul.f32 %v1319_v4, %v307_v25 }
  0xa1   : > { %790 = vst [vmem:[%s1328_s21 + $0x358] sm:$0xff] %v534_v29  ;;  %v309_v29 = vld [vmem:[%s1309_s28 + $0x468] sm:$0xff]  ;;  %v567_v32 = vmul.f32 %v1319_v4, %v308_v27 }
  0xa2   : > { %791 = vst [vmem:[%s1328_s21 + $0x360] sm:$0xff] %v535_v31  ;;  %v310_v31 = vld [vmem:[%s1309_s28 + $0x470] sm:$0xff]  ;;  %v568_v34 = vmul.f32 %v1319_v4, %v309_v29 }
  0xa3   : > { %792 = vst [vmem:[%s1328_s21 + $0x368] sm:$0xff] %v536_v33  ;;  %v311_v33 = vld [vmem:[%s1309_s28 + $0x478] sm:$0xff]  ;;  %v569_v36 = vmul.f32 %v1319_v4, %v310_v31 }
  0xa4   : > { %793 = vst [vmem:[%s1328_s21 + $0x370] sm:$0xff] %v537_v35  ;;  %v312_v35 = vld [vmem:[%s1309_s28 + $0x480] sm:$0xff]  ;;  %v570_v38 = vmul.f32 %v1319_v4, %v311_v33 }
  0xa5   : > { %794 = vst [vmem:[%s1328_s21 + $0x378] sm:$0xff] %v538_v37  ;;  %v313_v37 = vld [vmem:[%s1309_s28 + $0x488] sm:$0xff]  ;;  %v571_v40 = vmul.f32 %v1319_v4, %v312_v35 }
  0xa6   : > { %795 = vst [vmem:[%s1328_s21 + $0x380] sm:$0xff] %v539_v39  ;;  %v314_v39 = vld [vmem:[%s1309_s28 + $0x490] sm:$0xff]  ;;  %v572_v42 = vmul.f32 %v1319_v4, %v313_v37 }
  0xa7   : > { %796 = vst [vmem:[%s1328_s21 + $0x388] sm:$0xff] %v540_v41  ;;  %v315_v41 = vld [vmem:[%s1309_s28 + $0x498] sm:$0xff]  ;;  %v573_v44 = vmul.f32 %v1319_v4, %v314_v39 }
  0xa8   : > { %797 = vst [vmem:[%s1328_s21 + $0x390] sm:$0xff] %v541_v43  ;;  %v316_v43 = vld [vmem:[%s1309_s28 + $0x4a0] sm:$0xff]  ;;  %v574_v46 = vmul.f32 %v1319_v4, %v315_v41 }
  0xa9   : > { %798 = vst [vmem:[%s1328_s21 + $0x398] sm:$0xff] %v542_v45  ;;  %v317_v45 = vld [vmem:[%s1309_s28 + $0x4a8] sm:$0xff]  ;;  %v575_v48 = vmul.f32 %v1319_v4, %v316_v43 }
  0xaa   : > { %799 = vst [vmem:[%s1328_s21 + $0x3a0] sm:$0xff] %v543_v47  ;;  %v318_v47 = vld [vmem:[%s1309_s28 + $0x4b0] sm:$0xff]  ;;  %v576_v50 = vmul.f32 %v1319_v4, %v317_v45 }
  0xab   : > { %800 = vst [vmem:[%s1328_s21 + $0x3a8] sm:$0xff] %v544_v49  ;;  %v319_v49 = vld [vmem:[%s1309_s28 + $0x4b8] sm:$0xff]  ;;  %v577_v52 = vmul.f32 %v1319_v4, %v318_v47 }
  0xac   : > { %801 = vst [vmem:[%s1328_s21 + $0x3b0] sm:$0xff] %v545_v51  ;;  %v320_v51 = vld [vmem:[%s1309_s28 + $0x4c0] sm:$0xff]  ;;  %v578_v54 = vmul.f32 %v1319_v4, %v319_v49 }
  0xad   : > { %802 = vst [vmem:[%s1328_s21 + $0x3b8] sm:$0xff] %v546_v53  ;;  %v321_v53 = vld [vmem:[%s1309_s28 + $0x4c8] sm:$0xff]  ;;  %v579_v56 = vmul.f32 %v1319_v4, %v320_v51 }
  0xae   : > { %803 = vst [vmem:[%s1328_s21 + $0x3c0] sm:$0xff] %v547_v55  ;;  %v322_v55 = vld [vmem:[%s1309_s28 + $0x4d0] sm:$0xff]  ;;  %v580_v58 = vmul.f32 %v1319_v4, %v321_v53 }
  0xaf   : > { %804 = vst [vmem:[%s1328_s21 + $0x3c8] sm:$0xff] %v548_v57  ;;  %v323_v57 = vld [vmem:[%s1309_s28 + $0x4d8] sm:$0xff]  ;;  %v581_v60 = vmul.f32 %v1319_v4, %v322_v55 }
  0xb0   : > { %805 = vst [vmem:[%s1328_s21 + $0x3d0] sm:$0xff] %v549_v59  ;;  %v324_v59 = vld [vmem:[%s1309_s28 + $0x4e0] sm:$0xff]  ;;  %v582_v62 = vmul.f32 %v1319_v4, %v323_v57 }
  0xb1   : > { %806 = vst [vmem:[%s1328_s21 + $0x3d8] sm:$0xff] %v550_v61  ;;  %v325_v61 = vld [vmem:[%s1309_s28 + $0x4e8] sm:$0xff]  ;;  %v583_v0 = vmul.f32 %v1319_v4, %v324_v59 }
  0xb2   : > { %807 = vst [vmem:[%s1328_s21 + $0x3e0] sm:$0xff] %v551_v63  ;;  %v326_v63 = vld [vmem:[%s1309_s28 + $0x4f0] sm:$0xff]  ;;  %v584_v2 = vmul.f32 %v1319_v4, %v325_v61 }
  0xb3   : > { %808 = vst [vmem:[%s1328_s21 + $0x3e8] sm:$0xff] %v552_v1  ;;  %v327_v1 = vld [vmem:[%s1309_s28 + $0x4f8] sm:$0xff]  ;;  %v585_v5 = vmul.f32 %v1319_v4, %v326_v63 }
  0xb4   : > { %809 = vst [vmem:[%s1328_s21 + $0x3f0] sm:$0xff] %v553_v3  ;;  %v328_v3 = vld [vmem:[%s1309_s28 + $0x500] sm:$0xff]  ;;  %v586_v7 = vmul.f32 %v1319_v4, %v327_v1 }
  0xb5   : > { %810 = vst [vmem:[%s1328_s21 + $0x3f8] sm:$0xff] %v554_v6  ;;  %v329_v6 = vld [vmem:[%s1309_s28 + $0x508] sm:$0xff]  ;;  %v587_v9 = vmul.f32 %v1319_v4, %v328_v3 }
  0xb6   : > { %811 = vst [vmem:[%s1328_s21 + $0x400] sm:$0xff] %v555_v8  ;;  %v330_v8 = vld [vmem:[%s1309_s28 + $0x510] sm:$0xff]  ;;  %v588_v11 = vmul.f32 %v1319_v4, %v329_v6 }
  0xb7   : > { %812 = vst [vmem:[%s1328_s21 + $0x408] sm:$0xff] %v556_v10  ;;  %v331_v10 = vld [vmem:[%s1309_s28 + $0x518] sm:$0xff]  ;;  %v589_v13 = vmul.f32 %v1319_v4, %v330_v8 }
  0xb8   : > { %813 = vst [vmem:[%s1328_s21 + $0x410] sm:$0xff] %v557_v12  ;;  %v332_v12 = vld [vmem:[%s1309_s28 + $0x520] sm:$0xff]  ;;  %v590_v15 = vmul.f32 %v1319_v4, %v331_v10 }
  0xb9   : > { %814 = vst [vmem:[%s1328_s21 + $0x418] sm:$0xff] %v558_v14  ;;  %v333_v14 = vld [vmem:[%s1309_s28 + $0x528] sm:$0xff]  ;;  %v591_v17 = vmul.f32 %v1319_v4, %v332_v12 }
  0xba   : > { %815 = vst [vmem:[%s1328_s21 + $0x420] sm:$0xff] %v559_v16  ;;  %v334_v16 = vld [vmem:[%s1309_s28 + $0x530] sm:$0xff]  ;;  %v592_v19 = vmul.f32 %v1319_v4, %v333_v14 }
  0xbb   : > { %816 = vst [vmem:[%s1328_s21 + $0x428] sm:$0xff] %v560_v18  ;;  %v335_v18 = vld [vmem:[%s1309_s28 + $0x538] sm:$0xff]  ;;  %v593_v21 = vmul.f32 %v1319_v4, %v334_v16 }
  0xbc   : > { %817 = vst [vmem:[%s1328_s21 + $0x430] sm:$0xff] %v561_v20  ;;  %v336_v20 = vld [vmem:[%s1309_s28 + $0x540] sm:$0xff]  ;;  %v594_v23 = vmul.f32 %v1319_v4, %v335_v18 }
  0xbd   : > { %818 = vst [vmem:[%s1328_s21 + $0x438] sm:$0xff] %v562_v22  ;;  %v337_v22 = vld [vmem:[%s1309_s28 + $0x548] sm:$0xff]  ;;  %v595_v25 = vmul.f32 %v1319_v4, %v336_v20 }
  0xbe   : > { %819 = vst [vmem:[%s1328_s21 + $0x440] sm:$0xff] %v563_v24  ;;  %v338_v24 = vld [vmem:[%s1309_s28 + $0x550] sm:$0xff]  ;;  %v596_v27 = vmul.f32 %v1319_v4, %v337_v22 }
  0xbf   : > { %820 = vst [vmem:[%s1328_s21 + $0x448] sm:$0xff] %v564_v26  ;;  %v339_v26 = vld [vmem:[%s1309_s28 + $0x558] sm:$0xff]  ;;  %v597_v29 = vmul.f32 %v1319_v4, %v338_v24 }
  0xc0   : > { %821 = vst [vmem:[%s1328_s21 + $0x450] sm:$0xff] %v565_v28  ;;  %v340_v28 = vld [vmem:[%s1309_s28 + $0x560] sm:$0xff]  ;;  %v598_v31 = vmul.f32 %v1319_v4, %v339_v26 }
  0xc1   : > { %822 = vst [vmem:[%s1328_s21 + $0x458] sm:$0xff] %v566_v30  ;;  %v341_v30 = vld [vmem:[%s1309_s28 + $0x568] sm:$0xff]  ;;  %v599_v33 = vmul.f32 %v1319_v4, %v340_v28 }
  0xc2   : > { %823 = vst [vmem:[%s1328_s21 + $0x460] sm:$0xff] %v567_v32  ;;  %v342_v32 = vld [vmem:[%s1309_s28 + $0x570] sm:$0xff]  ;;  %v600_v35 = vmul.f32 %v1319_v4, %v341_v30 }
  0xc3   : > { %824 = vst [vmem:[%s1328_s21 + $0x468] sm:$0xff] %v568_v34  ;;  %v343_v34 = vld [vmem:[%s1309_s28 + $0x578] sm:$0xff]  ;;  %v601_v37 = vmul.f32 %v1319_v4, %v342_v32 }
  0xc4   : > { %825 = vst [vmem:[%s1328_s21 + $0x470] sm:$0xff] %v569_v36  ;;  %v344_v36 = vld [vmem:[%s1309_s28 + $0x580] sm:$0xff]  ;;  %v602_v39 = vmul.f32 %v1319_v4, %v343_v34 }
  0xc5   : > { %826 = vst [vmem:[%s1328_s21 + $0x478] sm:$0xff] %v570_v38  ;;  %v345_v38 = vld [vmem:[%s1309_s28 + $0x588] sm:$0xff]  ;;  %v603_v41 = vmul.f32 %v1319_v4, %v344_v36 }
  0xc6   : > { %827 = vst [vmem:[%s1328_s21 + $0x480] sm:$0xff] %v571_v40  ;;  %v346_v40 = vld [vmem:[%s1309_s28 + $0x590] sm:$0xff]  ;;  %v604_v43 = vmul.f32 %v1319_v4, %v345_v38 }
  0xc7   : > { %828 = vst [vmem:[%s1328_s21 + $0x488] sm:$0xff] %v572_v42  ;;  %v347_v42 = vld [vmem:[%s1309_s28 + $0x598] sm:$0xff]  ;;  %v605_v45 = vmul.f32 %v1319_v4, %v346_v40 }
  0xc8   : > { %829 = vst [vmem:[%s1328_s21 + $0x490] sm:$0xff] %v573_v44  ;;  %v348_v44 = vld [vmem:[%s1309_s28 + $0x5a0] sm:$0xff]  ;;  %v606_v47 = vmul.f32 %v1319_v4, %v347_v42 }
  0xc9   : > { %830 = vst [vmem:[%s1328_s21 + $0x498] sm:$0xff] %v574_v46  ;;  %v349_v46 = vld [vmem:[%s1309_s28 + $0x5a8] sm:$0xff]  ;;  %v607_v49 = vmul.f32 %v1319_v4, %v348_v44 }
  0xca   : > { %831 = vst [vmem:[%s1328_s21 + $0x4a0] sm:$0xff] %v575_v48  ;;  %v350_v48 = vld [vmem:[%s1309_s28 + $0x5b0] sm:$0xff]  ;;  %v608_v51 = vmul.f32 %v1319_v4, %v349_v46 }
  0xcb   : > { %832 = vst [vmem:[%s1328_s21 + $0x4a8] sm:$0xff] %v576_v50  ;;  %v351_v50 = vld [vmem:[%s1309_s28 + $0x5b8] sm:$0xff]  ;;  %v609_v53 = vmul.f32 %v1319_v4, %v350_v48 }
  0xcc   : > { %833 = vst [vmem:[%s1328_s21 + $0x4b0] sm:$0xff] %v577_v52  ;;  %v352_v52 = vld [vmem:[%s1309_s28 + $0x5c0] sm:$0xff]  ;;  %v610_v55 = vmul.f32 %v1319_v4, %v351_v50 }
  0xcd   : > { %834 = vst [vmem:[%s1328_s21 + $0x4b8] sm:$0xff] %v578_v54  ;;  %v353_v54 = vld [vmem:[%s1309_s28 + $0x5c8] sm:$0xff]  ;;  %v611_v57 = vmul.f32 %v1319_v4, %v352_v52 }
  0xce   : > { %835 = vst [vmem:[%s1328_s21 + $0x4c0] sm:$0xff] %v579_v56  ;;  %v354_v56 = vld [vmem:[%s1309_s28 + $0x5d0] sm:$0xff]  ;;  %v612_v59 = vmul.f32 %v1319_v4, %v353_v54 }
  0xcf   : > { %836 = vst [vmem:[%s1328_s21 + $0x4c8] sm:$0xff] %v580_v58  ;;  %v355_v58 = vld [vmem:[%s1309_s28 + $0x5d8] sm:$0xff]  ;;  %v613_v61 = vmul.f32 %v1319_v4, %v354_v56 }
  0xd0   : > { %837 = vst [vmem:[%s1328_s21 + $0x4d0] sm:$0xff] %v581_v60  ;;  %v356_v60 = vld [vmem:[%s1309_s28 + $0x5e0] sm:$0xff]  ;;  %v614_v63 = vmul.f32 %v1319_v4, %v355_v58 }
  0xd1   : > { %838 = vst [vmem:[%s1328_s21 + $0x4d8] sm:$0xff] %v582_v62  ;;  %v357_v62 = vld [vmem:[%s1309_s28 + $0x5e8] sm:$0xff]  ;;  %v615_v1 = vmul.f32 %v1319_v4, %v356_v60 }
  0xd2   : > { %839 = vst [vmem:[%s1328_s21 + $0x4e0] sm:$0xff] %v583_v0  ;;  %v358_v0 = vld [vmem:[%s1309_s28 + $0x5f0] sm:$0xff]  ;;  %v616_v3 = vmul.f32 %v1319_v4, %v357_v62 }
  0xd3   : > { %840 = vst [vmem:[%s1328_s21 + $0x4e8] sm:$0xff] %v584_v2  ;;  %v359_v2 = vld [vmem:[%s1309_s28 + $0x5f8] sm:$0xff]  ;;  %v617_v6 = vmul.f32 %v1319_v4, %v358_v0 }
  0xd4   : > { %841 = vst [vmem:[%s1328_s21 + $0x4f0] sm:$0xff] %v585_v5  ;;  %v360_v5 = vld [vmem:[%s1309_s28 + $0x600] sm:$0xff]  ;;  %v618_v8 = vmul.f32 %v1319_v4, %v359_v2 }
  0xd5   : > { %842 = vst [vmem:[%s1328_s21 + $0x4f8] sm:$0xff] %v586_v7  ;;  %v361_v7 = vld [vmem:[%s1309_s28 + $0x608] sm:$0xff]  ;;  %v619_v10 = vmul.f32 %v1319_v4, %v360_v5 }
  0xd6   : > { %843 = vst [vmem:[%s1328_s21 + $0x500] sm:$0xff] %v587_v9  ;;  %v362_v9 = vld [vmem:[%s1309_s28 + $0x610] sm:$0xff]  ;;  %v620_v12 = vmul.f32 %v1319_v4, %v361_v7 }
  0xd7   : > { %844 = vst [vmem:[%s1328_s21 + $0x508] sm:$0xff] %v588_v11  ;;  %v363_v11 = vld [vmem:[%s1309_s28 + $0x618] sm:$0xff]  ;;  %v621_v14 = vmul.f32 %v1319_v4, %v362_v9 }
  0xd8   : > { %845 = vst [vmem:[%s1328_s21 + $0x510] sm:$0xff] %v589_v13  ;;  %v364_v13 = vld [vmem:[%s1309_s28 + $0x620] sm:$0xff]  ;;  %v622_v16 = vmul.f32 %v1319_v4, %v363_v11 }
  0xd9   : > { %846 = vst [vmem:[%s1328_s21 + $0x518] sm:$0xff] %v590_v15  ;;  %v365_v15 = vld [vmem:[%s1309_s28 + $0x628] sm:$0xff]  ;;  %v623_v18 = vmul.f32 %v1319_v4, %v364_v13 }
  0xda   : > { %847 = vst [vmem:[%s1328_s21 + $0x520] sm:$0xff] %v591_v17  ;;  %v366_v17 = vld [vmem:[%s1309_s28 + $0x630] sm:$0xff]  ;;  %v624_v20 = vmul.f32 %v1319_v4, %v365_v15 }
  0xdb   : > { %848 = vst [vmem:[%s1328_s21 + $0x528] sm:$0xff] %v592_v19  ;;  %v367_v19 = vld [vmem:[%s1309_s28 + $0x638] sm:$0xff]  ;;  %v625_v22 = vmul.f32 %v1319_v4, %v366_v17 }
  0xdc   : > { %849 = vst [vmem:[%s1328_s21 + $0x530] sm:$0xff] %v593_v21  ;;  %v368_v21 = vld [vmem:[%s1309_s28 + $0x640] sm:$0xff]  ;;  %v626_v24 = vmul.f32 %v1319_v4, %v367_v19 }
  0xdd   : > { %850 = vst [vmem:[%s1328_s21 + $0x538] sm:$0xff] %v594_v23  ;;  %v369_v23 = vld [vmem:[%s1309_s28 + $0x648] sm:$0xff]  ;;  %v627_v26 = vmul.f32 %v1319_v4, %v368_v21 }
  0xde   : > { %851 = vst [vmem:[%s1328_s21 + $0x540] sm:$0xff] %v595_v25  ;;  %v370_v25 = vld [vmem:[%s1309_s28 + $0x650] sm:$0xff]  ;;  %v628_v28 = vmul.f32 %v1319_v4, %v369_v23 }
  0xdf   : > { %852 = vst [vmem:[%s1328_s21 + $0x548] sm:$0xff] %v596_v27  ;;  %v371_v27 = vld [vmem:[%s1309_s28 + $0x658] sm:$0xff]  ;;  %v629_v30 = vmul.f32 %v1319_v4, %v370_v25 }
  0xe0   : > { %853 = vst [vmem:[%s1328_s21 + $0x550] sm:$0xff] %v597_v29  ;;  %v372_v29 = vld [vmem:[%s1309_s28 + $0x660] sm:$0xff]  ;;  %v630_v32 = vmul.f32 %v1319_v4, %v371_v27 }
  0xe1   : > { %854 = vst [vmem:[%s1328_s21 + $0x558] sm:$0xff] %v598_v31  ;;  %v373_v31 = vld [vmem:[%s1309_s28 + $0x668] sm:$0xff]  ;;  %v631_v34 = vmul.f32 %v1319_v4, %v372_v29 }
  0xe2   : > { %855 = vst [vmem:[%s1328_s21 + $0x560] sm:$0xff] %v599_v33  ;;  %v374_v33 = vld [vmem:[%s1309_s28 + $0x670] sm:$0xff]  ;;  %v632_v36 = vmul.f32 %v1319_v4, %v373_v31 }
  0xe3   : > { %856 = vst [vmem:[%s1328_s21 + $0x568] sm:$0xff] %v600_v35  ;;  %v375_v35 = vld [vmem:[%s1309_s28 + $0x678] sm:$0xff]  ;;  %v633_v38 = vmul.f32 %v1319_v4, %v374_v33 }
  0xe4   : > { %857 = vst [vmem:[%s1328_s21 + $0x570] sm:$0xff] %v601_v37  ;;  %v376_v37 = vld [vmem:[%s1309_s28 + $0x680] sm:$0xff]  ;;  %v634_v40 = vmul.f32 %v1319_v4, %v375_v35 }
  0xe5   : > { %858 = vst [vmem:[%s1328_s21 + $0x578] sm:$0xff] %v602_v39  ;;  %v377_v39 = vld [vmem:[%s1309_s28 + $0x688] sm:$0xff]  ;;  %v635_v42 = vmul.f32 %v1319_v4, %v376_v37 }
  0xe6   : > { %859 = vst [vmem:[%s1328_s21 + $0x580] sm:$0xff] %v603_v41  ;;  %v378_v41 = vld [vmem:[%s1309_s28 + $0x690] sm:$0xff]  ;;  %v636_v44 = vmul.f32 %v1319_v4, %v377_v39 }
  0xe7   : > { %860 = vst [vmem:[%s1328_s21 + $0x588] sm:$0xff] %v604_v43  ;;  %v379_v43 = vld [vmem:[%s1309_s28 + $0x698] sm:$0xff]  ;;  %v637_v46 = vmul.f32 %v1319_v4, %v378_v41 }
  0xe8   : > { %861 = vst [vmem:[%s1328_s21 + $0x590] sm:$0xff] %v605_v45  ;;  %v380_v45 = vld [vmem:[%s1309_s28 + $0x6a0] sm:$0xff]  ;;  %v638_v48 = vmul.f32 %v1319_v4, %v379_v43 }
  0xe9   : > { %862 = vst [vmem:[%s1328_s21 + $0x598] sm:$0xff] %v606_v47  ;;  %v381_v47 = vld [vmem:[%s1309_s28 + $0x6a8] sm:$0xff]  ;;  %v639_v50 = vmul.f32 %v1319_v4, %v380_v45 }
  0xea   : > { %863 = vst [vmem:[%s1328_s21 + $0x5a0] sm:$0xff] %v607_v49  ;;  %v382_v49 = vld [vmem:[%s1309_s28 + $0x6b0] sm:$0xff]  ;;  %v640_v52 = vmul.f32 %v1319_v4, %v381_v47 }
  0xeb   : > { %864 = vst [vmem:[%s1328_s21 + $0x5a8] sm:$0xff] %v608_v51  ;;  %v383_v51 = vld [vmem:[%s1309_s28 + $0x6b8] sm:$0xff]  ;;  %v641_v54 = vmul.f32 %v1319_v4, %v382_v49 }
  0xec   : > { %865 = vst [vmem:[%s1328_s21 + $0x5b0] sm:$0xff] %v609_v53  ;;  %v384_v53 = vld [vmem:[%s1309_s28 + $0x6c0] sm:$0xff]  ;;  %v642_v56 = vmul.f32 %v1319_v4, %v383_v51 }
  0xed   : > { %866 = vst [vmem:[%s1328_s21 + $0x5b8] sm:$0xff] %v610_v55  ;;  %v385_v55 = vld [vmem:[%s1309_s28 + $0x6c8] sm:$0xff]  ;;  %v643_v58 = vmul.f32 %v1319_v4, %v384_v53 }
  0xee   : > { %867 = vst [vmem:[%s1328_s21 + $0x5c0] sm:$0xff] %v611_v57  ;;  %v386_v57 = vld [vmem:[%s1309_s28 + $0x6d0] sm:$0xff]  ;;  %v644_v60 = vmul.f32 %v1319_v4, %v385_v55 }
  0xef   : > { %868 = vst [vmem:[%s1328_s21 + $0x5c8] sm:$0xff] %v612_v59  ;;  %v387_v59 = vld [vmem:[%s1309_s28 + $0x6d8] sm:$0xff]  ;;  %v645_v62 = vmul.f32 %v1319_v4, %v386_v57 }
  0xf0   : > { %869 = vst [vmem:[%s1328_s21 + $0x5d0] sm:$0xff] %v613_v61  ;;  %v388_v61 = vld [vmem:[%s1309_s28 + $0x6e0] sm:$0xff]  ;;  %v646_v0 = vmul.f32 %v1319_v4, %v387_v59 }
  0xf1   : > { %870 = vst [vmem:[%s1328_s21 + $0x5d8] sm:$0xff] %v614_v63  ;;  %v389_v63 = vld [vmem:[%s1309_s28 + $0x6e8] sm:$0xff]  ;;  %v647_v2 = vmul.f32 %v1319_v4, %v388_v61 }
  0xf2   : > { %871 = vst [vmem:[%s1328_s21 + $0x5e0] sm:$0xff] %v615_v1  ;;  %v390_v1 = vld [vmem:[%s1309_s28 + $0x6f0] sm:$0xff]  ;;  %v648_v5 = vmul.f32 %v1319_v4, %v389_v63 }
  0xf3   : > { %872 = vst [vmem:[%s1328_s21 + $0x5e8] sm:$0xff] %v616_v3  ;;  %v391_v3 = vld [vmem:[%s1309_s28 + $0x6f8] sm:$0xff]  ;;  %v649_v7 = vmul.f32 %v1319_v4, %v390_v1 }
  0xf4   : > { %873 = vst [vmem:[%s1328_s21 + $0x5f0] sm:$0xff] %v617_v6  ;;  %v392_v6 = vld [vmem:[%s1309_s28 + $0x700] sm:$0xff]  ;;  %v650_v9 = vmul.f32 %v1319_v4, %v391_v3 }
  0xf5   : > { %874 = vst [vmem:[%s1328_s21 + $0x5f8] sm:$0xff] %v618_v8  ;;  %v393_v8 = vld [vmem:[%s1309_s28 + $0x708] sm:$0xff]  ;;  %v651_v11 = vmul.f32 %v1319_v4, %v392_v6 }
  0xf6   : > { %875 = vst [vmem:[%s1328_s21 + $0x600] sm:$0xff] %v619_v10  ;;  %v394_v10 = vld [vmem:[%s1309_s28 + $0x710] sm:$0xff]  ;;  %v652_v13 = vmul.f32 %v1319_v4, %v393_v8 }
  0xf7   : > { %876 = vst [vmem:[%s1328_s21 + $0x608] sm:$0xff] %v620_v12  ;;  %v395_v12 = vld [vmem:[%s1309_s28 + $0x718] sm:$0xff]  ;;  %v653_v15 = vmul.f32 %v1319_v4, %v394_v10 }
  0xf8   : > { %877 = vst [vmem:[%s1328_s21 + $0x610] sm:$0xff] %v621_v14  ;;  %v396_v14 = vld [vmem:[%s1309_s28 + $0x720] sm:$0xff]  ;;  %v654_v17 = vmul.f32 %v1319_v4, %v395_v12 }
  0xf9   : > { %878 = vst [vmem:[%s1328_s21 + $0x618] sm:$0xff] %v622_v16  ;;  %v397_v16 = vld [vmem:[%s1309_s28 + $0x728] sm:$0xff]  ;;  %v655_v19 = vmul.f32 %v1319_v4, %v396_v14 }
  0xfa   : > { %879 = vst [vmem:[%s1328_s21 + $0x620] sm:$0xff] %v623_v18  ;;  %v398_v18 = vld [vmem:[%s1309_s28 + $0x730] sm:$0xff]  ;;  %v656_v21 = vmul.f32 %v1319_v4, %v397_v16 }
  0xfb   : > { %880 = vst [vmem:[%s1328_s21 + $0x628] sm:$0xff] %v624_v20  ;;  %v399_v20 = vld [vmem:[%s1309_s28 + $0x738] sm:$0xff]  ;;  %v657_v23 = vmul.f32 %v1319_v4, %v398_v18 }
  0xfc   : > { %881 = vst [vmem:[%s1328_s21 + $0x630] sm:$0xff] %v625_v22  ;;  %v400_v22 = vld [vmem:[%s1309_s28 + $0x740] sm:$0xff]  ;;  %v658_v25 = vmul.f32 %v1319_v4, %v399_v20 }
  0xfd   : > { %882 = vst [vmem:[%s1328_s21 + $0x638] sm:$0xff] %v626_v24  ;;  %v401_v24 = vld [vmem:[%s1309_s28 + $0x748] sm:$0xff]  ;;  %v659_v27 = vmul.f32 %v1319_v4, %v400_v22 }
  0xfe   : > { %883 = vst [vmem:[%s1328_s21 + $0x640] sm:$0xff] %v627_v26  ;;  %v402_v26 = vld [vmem:[%s1309_s28 + $0x750] sm:$0xff]  ;;  %v660_v29 = vmul.f32 %v1319_v4, %v401_v24 }
  0xff   : > { %884 = vst [vmem:[%s1328_s21 + $0x648] sm:$0xff] %v628_v28  ;;  %v403_v28 = vld [vmem:[%s1309_s28 + $0x758] sm:$0xff]  ;;  %v661_v31 = vmul.f32 %v1319_v4, %v402_v26 }
 0x100   : > { %885 = vst [vmem:[%s1328_s21 + $0x650] sm:$0xff] %v629_v30  ;;  %v404_v30 = vld [vmem:[%s1309_s28 + $0x760] sm:$0xff]  ;;  %v662_v33 = vmul.f32 %v1319_v4, %v403_v28 }
 0x101   : > { %886 = vst [vmem:[%s1328_s21 + $0x658] sm:$0xff] %v630_v32  ;;  %v405_v32 = vld [vmem:[%s1309_s28 + $0x768] sm:$0xff]  ;;  %v663_v35 = vmul.f32 %v1319_v4, %v404_v30 }
 0x102   : > { %887 = vst [vmem:[%s1328_s21 + $0x660] sm:$0xff] %v631_v34  ;;  %v406_v34 = vld [vmem:[%s1309_s28 + $0x770] sm:$0xff]  ;;  %v664_v37 = vmul.f32 %v1319_v4, %v405_v32 }
 0x103   : > { %888 = vst [vmem:[%s1328_s21 + $0x668] sm:$0xff] %v632_v36  ;;  %v407_v36 = vld [vmem:[%s1309_s28 + $0x778] sm:$0xff]  ;;  %v665_v39 = vmul.f32 %v1319_v4, %v406_v34 }
 0x104   : > { %889 = vst [vmem:[%s1328_s21 + $0x670] sm:$0xff] %v633_v38  ;;  %v408_v38 = vld [vmem:[%s1309_s28 + $0x780] sm:$0xff]  ;;  %v666_v41 = vmul.f32 %v1319_v4, %v407_v36 }
 0x105   : > { %890 = vst [vmem:[%s1328_s21 + $0x678] sm:$0xff] %v634_v40  ;;  %v409_v40 = vld [vmem:[%s1309_s28 + $0x788] sm:$0xff]  ;;  %v667_v43 = vmul.f32 %v1319_v4, %v408_v38 }
 0x106   : > { %891 = vst [vmem:[%s1328_s21 + $0x680] sm:$0xff] %v635_v42  ;;  %v410_v42 = vld [vmem:[%s1309_s28 + $0x790] sm:$0xff]  ;;  %v668_v45 = vmul.f32 %v1319_v4, %v409_v40 }
 0x107   : > { %892 = vst [vmem:[%s1328_s21 + $0x688] sm:$0xff] %v636_v44  ;;  %v411_v44 = vld [vmem:[%s1309_s28 + $0x798] sm:$0xff]  ;;  %v669_v47 = vmul.f32 %v1319_v4, %v410_v42 }
 0x108   : > { %893 = vst [vmem:[%s1328_s21 + $0x690] sm:$0xff] %v637_v46  ;;  %v412_v46 = vld [vmem:[%s1309_s28 + $0x7a0] sm:$0xff]  ;;  %v670_v49 = vmul.f32 %v1319_v4, %v411_v44 }
 0x109   : > { %894 = vst [vmem:[%s1328_s21 + $0x698] sm:$0xff] %v638_v48  ;;  %v413_v48 = vld [vmem:[%s1309_s28 + $0x7a8] sm:$0xff]  ;;  %v671_v51 = vmul.f32 %v1319_v4, %v412_v46 }
 0x10a   : > { %895 = vst [vmem:[%s1328_s21 + $0x6a0] sm:$0xff] %v639_v50  ;;  %v414_v50 = vld [vmem:[%s1309_s28 + $0x7b0] sm:$0xff]  ;;  %v672_v53 = vmul.f32 %v1319_v4, %v413_v48 }
 0x10b   : > { %896 = vst [vmem:[%s1328_s21 + $0x6a8] sm:$0xff] %v640_v52  ;;  %v415_v52 = vld [vmem:[%s1309_s28 + $0x7b8] sm:$0xff]  ;;  %v673_v55 = vmul.f32 %v1319_v4, %v414_v50 }
 0x10c   : > { %897 = vst [vmem:[%s1328_s21 + $0x6b0] sm:$0xff] %v641_v54  ;;  %v416_v54 = vld [vmem:[%s1309_s28 + $0x7c0] sm:$0xff]  ;;  %v674_v57 = vmul.f32 %v1319_v4, %v415_v52 }
 0x10d   : > { %898 = vst [vmem:[%s1328_s21 + $0x6b8] sm:$0xff] %v642_v56  ;;  %v417_v56 = vld [vmem:[%s1309_s28 + $0x7c8] sm:$0xff]  ;;  %v675_v59 = vmul.f32 %v1319_v4, %v416_v54 }
 0x10e   : > { %899 = vst [vmem:[%s1328_s21 + $0x6c0] sm:$0xff] %v643_v58  ;;  %v418_v58 = vld [vmem:[%s1309_s28 + $0x7d0] sm:$0xff]  ;;  %v676_v61 = vmul.f32 %v1319_v4, %v417_v56 }
 0x10f   : > { %900 = vst [vmem:[%s1328_s21 + $0x6c8] sm:$0xff] %v644_v60  ;;  %v419_v60 = vld [vmem:[%s1309_s28 + $0x7d8] sm:$0xff]  ;;  %v677_v63 = vmul.f32 %v1319_v4, %v418_v58 }
 0x110   : > { %901 = vst [vmem:[%s1328_s21 + $0x6d0] sm:$0xff] %v645_v62  ;;  %v420_v62 = vld [vmem:[%s1309_s28 + $0x7e0] sm:$0xff]  ;;  %v678_v1 = vmul.f32 %v1319_v4, %v419_v60 }
 0x111   : > { %902 = vst [vmem:[%s1328_s21 + $0x6d8] sm:$0xff] %v646_v0  ;;  %v421_v0 = vld [vmem:[%s1309_s28 + $0x7e8] sm:$0xff]  ;;  %v679_v3 = vmul.f32 %v1319_v4, %v420_v62 }
 0x112   : > { %903 = vst [vmem:[%s1328_s21 + $0x6e0] sm:$0xff] %v647_v2  ;;  %v422_v2 = vld [vmem:[%s1309_s28 + $0x7f0] sm:$0xff]  ;;  %v680_v6 = vmul.f32 %v1319_v4, %v421_v0 }
 0x113   : > { %904 = vst [vmem:[%s1328_s21 + $0x6e8] sm:$0xff] %v648_v5  ;;  %v423_v5 = vld [vmem:[%s1309_s28 + $0x7f8] sm:$0xff] }
 0x114   : > { %905 = vst [vmem:[%s1328_s21 + $0x6f0] sm:$0xff] %v649_v7  ;;  %v681_v7 = vmul.f32 %v1319_v4, %v422_v2  ;;  %v682_v8 = vmul.f32 %v1319_v4, %v423_v5 }
 0x115   : > { %906 = vst [vmem:[%s1328_s21 + $0x6f8] sm:$0xff] %v650_v9 }
 0x116   : > { %907 = vst [vmem:[%s1328_s21 + $0x700] sm:$0xff] %v651_v11 }
 0x117   : > { %908 = vst [vmem:[%s1328_s21 + $0x708] sm:$0xff] %v652_v13 }
 0x118   : > { %909 = vst [vmem:[%s1328_s21 + $0x710] sm:$0xff] %v653_v15 }
 0x119   : > { %910 = vst [vmem:[%s1328_s21 + $0x718] sm:$0xff] %v654_v17 }
 0x11a   : > { %911 = vst [vmem:[%s1328_s21 + $0x720] sm:$0xff] %v655_v19 }
 0x11b   : > { %912 = vst [vmem:[%s1328_s21 + $0x728] sm:$0xff] %v656_v21 }
 0x11c   : > { %913 = vst [vmem:[%s1328_s21 + $0x730] sm:$0xff] %v657_v23 }
 0x11d   : > { %914 = vst [vmem:[%s1328_s21 + $0x738] sm:$0xff] %v658_v25 }
 0x11e   : > { %915 = vst [vmem:[%s1328_s21 + $0x740] sm:$0xff] %v659_v27 }
 0x11f   : > { %916 = vst [vmem:[%s1328_s21 + $0x748] sm:$0xff] %v660_v29 }
 0x120   : > { %917 = vst [vmem:[%s1328_s21 + $0x750] sm:$0xff] %v661_v31 }
 0x121   : > { %918 = vst [vmem:[%s1328_s21 + $0x758] sm:$0xff] %v662_v33 }
 0x122   : > { %919 = vst [vmem:[%s1328_s21 + $0x760] sm:$0xff] %v663_v35 }
 0x123   : > { %920 = vst [vmem:[%s1328_s21 + $0x768] sm:$0xff] %v664_v37 }
 0x124   : > { %921 = vst [vmem:[%s1328_s21 + $0x770] sm:$0xff] %v665_v39 }
 0x125   : > { %922 = vst [vmem:[%s1328_s21 + $0x778] sm:$0xff] %v666_v41 }
 0x126   : > { %923 = vst [vmem:[%s1328_s21 + $0x780] sm:$0xff] %v667_v43 }
 0x127   : > { %924 = vst [vmem:[%s1328_s21 + $0x788] sm:$0xff] %v668_v45 }
 0x128   : > { %925 = vst [vmem:[%s1328_s21 + $0x790] sm:$0xff] %v669_v47 }
 0x129   : > { %926 = vst [vmem:[%s1328_s21 + $0x798] sm:$0xff] %v670_v49 }
 0x12a   : > { %927 = vst [vmem:[%s1328_s21 + $0x7a0] sm:$0xff] %v671_v51 }
 0x12b   : > { %928 = vst [vmem:[%s1328_s21 + $0x7a8] sm:$0xff] %v672_v53 }
 0x12c   : > { %929 = vst [vmem:[%s1328_s21 + $0x7b0] sm:$0xff] %v673_v55 }
 0x12d   : > { %930 = vst [vmem:[%s1328_s21 + $0x7b8] sm:$0xff] %v674_v57 }
 0x12e   : > { %931 = vst [vmem:[%s1328_s21 + $0x7c0] sm:$0xff] %v675_v59 }
 0x12f   : > { %932 = vst [vmem:[%s1328_s21 + $0x7c8] sm:$0xff] %v676_v61 }
 0x130   : > { %933 = vst [vmem:[%s1328_s21 + $0x7d0] sm:$0xff] %v677_v63 }
 0x131   : > { %934 = vst [vmem:[%s1328_s21 + $0x7d8] sm:$0xff] %v678_v1 }
 0x132   : > { %935 = vst [vmem:[%s1328_s21 + $0x7e0] sm:$0xff] %v679_v3 }
 0x133   : > { %936 = vst [vmem:[%s1328_s21 + $0x7e8] sm:$0xff] %v680_v6 }
 0x134   : > { %937 = vst [vmem:[%s1328_s21 + $0x7f0] sm:$0xff] %v681_v7 }
 0x135   : > { %938 = vst [vmem:[%s1328_s21 + $0x7f8] sm:$0xff] %v682_v8 }
 0x136   : > { %1156 = shalt.err (!%p1153_p4)
}
 0x137   : > { %s1199_s25 = smov 512   ;;  %s1200_s26 = smov 32  }
 0x138   : > { %1051 = dma.vmem_to_hbm [thread:$0]  (%p1269_p11), %s954_s6, 32768, %s956_s7, %s940_s8, %s1199_s25, %s1199_s25, %s1200_s26  }
 0x139 PF: > { %s970_s27 = sand.u32 1, %s1183_s11   ;;  %p2129_p7 = scmp.ge.s32.totalorder %s1195_s14, 2 }
 0x13a   : > { %s971_s28 = scalar_lea.sflag [#allocation5], %s970_s27 }
 0x13b   : > { %p1058_p5 = pnand %p2129_p7, %p1273_p12 }
 0x13d   : > { %p1059_p8 = pneg %p1058_p5 }
 0x13f   : > { %1178 = dma.done.wait (%p1059_p8), %s971_s28, 32768  }
 0x140   : > { %1180 = vsyncadd (%p1059_p8), %s971_s28, 4294934528  ;;  %p16_p10 = scmp.ge.s32.totalorder %s1244_s16, 4   ;;  %s2130_s11 = smov %s1187_s12 }
 0x141   : > { %s2131_s12 = smov %s1191_s13  ;;  %s2132_s13 = smov %s1256_s19 }
 0x142   : > { %s2133_s14 = smov %s1244_s16  ;;  %18 = sbr.rel (!%p16_p10) target bundleno = 7 (0x7), region = 73 }
 0x147   :  { %977 = vsyncpa [#allocation4], 1 }
 0x148   :  { %979 = vsyncpa [#allocation4 + $0x1], 1 }
 0x149   :  { %980 = vsyncpa [#allocation5], 1 }
 0x14a   :  { %982 = vsyncpa [#allocation5 + $0x1], 1 }

</bundles_post_ra>
